<compile_context>
chip_gen: v7x
topology: tpu7x:2x2x1
jax: 0.10.0
libtpu: 0.0.40
codegen_flags: <defaults>
</compile_context>

<pallas_src>
import functools

import jax
import jax.numpy as jnp
from jax.experimental import pallas as pl
from jax.experimental.pallas import tpu as pltpu


def _round_up(n, m):
    return ((n + m - 1) // m) * m


def _mlp_body(x, w1_ref, b1_ref, w2_ref, b2_ref, o_ref, num_classes):
    """Shared body: Linear -> ReLU -> Linear -> log_softmax over padded classes."""
    # Linear 1 + ReLU (bf16 MXU inputs, f32 accumulation; elementwise stays f32).
    h = jnp.dot(x.astype(w1_ref.dtype), w1_ref[...],
                preferred_element_type=jnp.float32) + b1_ref[...]
    h = jnp.maximum(h, 0.0)

    # Linear 2
    z = jnp.dot(h.astype(w2_ref.dtype), w2_ref[...],
                preferred_element_type=jnp.float32) + b2_ref[...]

    # Padded class lanes -> -inf so they contribute nothing to max / logsumexp.
    col = jax.lax.broadcasted_iota(jnp.int32, z.shape, dimension=1)
    z = jnp.where(col < num_classes, z, -jnp.inf)

    # Numerically stable log_softmax along the class axis.
    m = jnp.max(z, axis=-1, keepdims=True)
    s = z - m
    lse = jnp.log(jnp.sum(jnp.exp(s), axis=-1, keepdims=True))
    o_ref[...] = (s - lse).astype(o_ref.dtype)


def _mlp_kernel(x_ref, w1_ref, b1_ref, w2_ref, b2_ref, o_ref, *, num_classes):
    """Inference path (no dropout)."""
    x = x_ref[...].astype(jnp.float32)
    _mlp_body(x, w1_ref, b1_ref, w2_ref, b2_ref, o_ref, num_classes)


def _mlp_dropout_kernel(x_ref, mask_ref, w1_ref, b1_ref, w2_ref, b2_ref, o_ref,
                        *, num_classes):
    """Training path: mask already holds 0 or 1/(1-p) (inverted dropout)."""
    x = x_ref[...].astype(jnp.float32) * mask_ref[...]
    _mlp_body(x, w1_ref, b1_ref, w2_ref, b2_ref, o_ref, num_classes)


def network_forward(x, w1, b1, w2, b2, *, key=None, training=True, drop_p=0.5):
    """x: (B, D); w1: (D, H); b1: (1, H); w2: (H, C); b2: (1, C). Returns (B, C) f32."""
    B, D = x.shape
    H = w1.shape[1]
    C = w2.shape[1]

    # Lane-/sublane-friendly padded shapes.  Zero padding is mathematically inert.
    Dp = _round_up(D, 128)
    Hp = _round_up(H, 128)
    Cp = _round_up(C, 128)
    block_b = 128 if B >= 128 else _round_up(B, 8)
    Bp = _round_up(B, block_b)

    f32, bf16 = jnp.float32, jnp.bfloat16

    xp = jnp.zeros((Bp, Dp), f32).at[:B, :D].set(x.astype(f32))
    w1p = jnp.zeros((Dp, Hp), bf16).at[:D, :H].set(w1.astype(bf16))
    b1p = jnp.zeros((1, Hp), f32).at[:, :H].set(b1.reshape(1, H).astype(f32))
    w2p = jnp.zeros((Hp, Cp), bf16).at[:H, :C].set(w2.astype(bf16))
    b2p = jnp.zeros((1, Cp), f32).at[:, :C].set(b2.reshape(1, C).astype(f32))

    grid = (Bp // block_b,)
    x_spec = pl.BlockSpec((block_b, Dp), lambda i: (i, 0))
    w1_spec = pl.BlockSpec((Dp, Hp), lambda i: (0, 0))
    b1_spec = pl.BlockSpec((1, Hp), lambda i: (0, 0))
    w2_spec = pl.BlockSpec((Hp, Cp), lambda i: (0, 0))
    b2_spec = pl.BlockSpec((1, Cp), lambda i: (0, 0))
    out_spec = pl.BlockSpec((block_b, Cp), lambda i: (i, 0))

    use_dropout = training and drop_p > 0.0
    if use_dropout:
        if key is None:
            key = jax.random.PRNGKey(0)
        keep = jax.random.bernoulli(key, 1.0 - drop_p, (Bp, Dp))
        # Pre-scaled inverted-dropout multiplier: 1/(1-p) where kept, 0 where dropped.
        mask = keep.astype(f32) * (1.0 / (1.0 - drop_p))
        kernel = functools.partial(_mlp_dropout_kernel, num_classes=C)
        in_specs = [x_spec, x_spec, w1_spec, b1_spec, w2_spec, b2_spec]
        args = (xp, mask, w1p, b1p, w2p, b2p)
    else:
        kernel = functools.partial(_mlp_kernel, num_classes=C)
        in_specs = [x_spec, w1_spec, b1_spec, w2_spec, b2_spec]
        args = (xp, w1p, b1p, w2p, b2p)

    out_padded = pl.pallas_call(
        kernel,
        out_shape=jax.ShapeDtypeStruct((Bp, Cp), f32),
        grid=grid,
        in_specs=in_specs,
        out_specs=out_spec,
        compiler_params=pltpu.CompilerParams(
            dimension_semantics=("parallel",)),
    )(*args)

    return out_padded[:B, :C]


def _reference_forward(x, w1, b1, w2, b2, mask=None):
    """Pure-JAX reference (f32) matching the PyTorch forward."""
    x = x.astype(jnp.float32)
    if mask is not None:
        x = x * mask
    h = jnp.maximum(x @ w1 + b1, 0.0)
    z = h @ w2 + b2
    return jax.nn.log_softmax(z, axis=1)


def init_params(key, input_units, hidden_units, num_classes=102):
    """Mimics nn.Linear's U(-1/sqrt(fan_in), 1/sqrt(fan_in)); weights stored (in, out)."""
    k1, k2, k3, k4 = jax.random.split(key, 4)
    lim1 = 1.0 / jnp.sqrt(float(input_units))
    lim2 = 1.0 / jnp.sqrt(float(hidden_units))
    w1 = jax.random.uniform(k1, (input_units, hidden_units), jnp.float32, -lim1, lim1)
    b1 = jax.random.uniform(k2, (1, hidden_units), jnp.float32, -lim1, lim1)
    w2 = jax.random.uniform(k3, (hidden_units, num_classes), jnp.float32, -lim2, lim2)
    b2 = jax.random.uniform(k4, (1, num_classes), jnp.float32, -lim2, lim2)
    return w1, b1, w2, b2


if __name__ == "__main__":
    INPUT_UNITS = 32
    HIDDEN_UNITS = 64
    NUM_CLASSES = 102
    BATCH = 8

    key = jax.random.PRNGKey(0)
    kx, kp, kd = jax.random.split(key, 3)
    x = jax.random.normal(kx, (BATCH, INPUT_UNITS), jnp.float32)
    w1, b1, w2, b2 = init_params(kp, INPUT_UNITS, HIDDEN_UNITS, NUM_CLASSES)

    # Training path (dropout active — matches a freshly constructed nn.Module).
    out_train = network_forward(x, w1, b1, w2, b2, key=kd, training=True, drop_p=0.5)
    out_train = jax.block_until_ready(out_train)
    assert out_train.shape == (BATCH, NUM_CLASSES)
    probs_sum_train = jnp.exp(out_train).sum(axis=1)
    assert bool(jnp.all(jnp.abs(probs_sum_train - 1.0) < 1e-4))

    # Inference path (dropout disabled) — deterministic, compare vs pure-JAX reference.
    out_eval = network_forward(x, w1, b1, w2, b2, training=False)
    out_eval = jax.block_until_ready(out_eval)
    ref_eval = _reference_forward(x, w1, b1, w2, b2)
    assert out_eval.shape == (BATCH, NUM_CLASSES)
    probs_sum_eval = jnp.exp(out_eval).sum(axis=1)
    assert bool(jnp.all(jnp.abs(probs_sum_eval - 1.0) < 1e-4))
    # bf16 weights in the kernel vs f32 reference -> loose tolerance.
    assert bool(jnp.all(jnp.abs(out_eval - ref_eval) < 5e-2))

    print("KERNEL_OK")
</pallas_src>

<mosaic_0001>
module attributes {stable_mosaic.version = 11 : i64} {
  func.func @_mlp_dropout_kernel(%arg0: i32, %arg1: memref<8x128xf32, #tpu.memory_space<vmem>>, %arg2: memref<8x128xf32, #tpu.memory_space<vmem>>, %arg3: memref<128x128xbf16, #tpu.memory_space<vmem>>, %arg4: memref<1x128xf32, #tpu.memory_space<vmem>>, %arg5: memref<128x128xbf16, #tpu.memory_space<vmem>>, %arg6: memref<1x128xf32, #tpu.memory_space<vmem>>, %arg7: memref<8x128xf32, #tpu.memory_space<vmem>>) attributes {dimension_semantics = [#tpu.dimension_semantics<parallel>], iteration_bounds = array<i64: 1>, scalar_prefetch = 0 : i64, scratch_operands = 0 : i64, tpu.core_type = #tpu.core_type<tc>, window_params = [{transform_indices = @transform_0, window_bounds = array<i64: 8, 128>}, {transform_indices = @transform_1, window_bounds = array<i64: 8, 128>}, {pipeline_mode = #tpu.pipeline_mode<synchronous>, transform_indices = @transform_2, window_bounds = array<i64: 128, 128>}, {pipeline_mode = #tpu.pipeline_mode<synchronous>, transform_indices = @transform_3, window_bounds = array<i64: 1, 128>}, {pipeline_mode = #tpu.pipeline_mode<synchronous>, transform_indices = @transform_4, window_bounds = array<i64: 128, 128>}, {pipeline_mode = #tpu.pipeline_mode<synchronous>, transform_indices = @transform_5, window_bounds = array<i64: 1, 128>}, {transform_indices = @transform_6, window_bounds = array<i64: 8, 128>}]} {
    %c0 = arith.constant 0 : index
    %c0_0 = arith.constant 0 : index
    %0 = vector.load %arg1[%c0, %c0_0] : memref<8x128xf32, #tpu.memory_space<vmem>>, vector<8x128xf32>
    %c0_1 = arith.constant 0 : index
    %c0_2 = arith.constant 0 : index
    %1 = vector.load %arg2[%c0_1, %c0_2] : memref<8x128xf32, #tpu.memory_space<vmem>>, vector<8x128xf32>
    %2 = arith.mulf %0, %1 : vector<8x128xf32>
    %3 = arith.truncf %2 : vector<8x128xf32> to vector<8x128xbf16>
    %c0_3 = arith.constant 0 : index
    %c0_4 = arith.constant 0 : index
    %4 = vector.load %arg3[%c0_3, %c0_4] : memref<128x128xbf16, #tpu.memory_space<vmem>>, vector<128x128xbf16>
    %cst = arith.constant dense<0.000000e+00> : vector<8x128xf32>
    %5 = tpu.matmul %3, %4, %cst {dimension_numbers = #tpu.dot_dimension_numbers<[1], [0], [0], [1], [0, 0, 1, 1], [], []>} : vector<8x128xbf16>, vector<128x128xbf16>, vector<8x128xf32> -> vector<8x128xf32>
    %c0_5 = arith.constant 0 : index
    %c0_6 = arith.constant 0 : index
    %6 = vector.load %arg4[%c0_5, %c0_6] : memref<1x128xf32, #tpu.memory_space<vmem>>, vector<1x128xf32>
    %7 = vector.broadcast %6 : vector<1x128xf32> to vector<8x128xf32>
    %8 = arith.addf %5, %7 : vector<8x128xf32>
    %cst_7 = arith.constant 0.000000e+00 : f32
    %9 = vector.broadcast %cst_7 : f32 to vector<8x128xf32>
    %10 = arith.maximumf %8, %9 : vector<8x128xf32>
    %11 = arith.truncf %10 : vector<8x128xf32> to vector<8x128xbf16>
    %c0_8 = arith.constant 0 : index
    %c0_9 = arith.constant 0 : index
    %12 = vector.load %arg5[%c0_8, %c0_9] : memref<128x128xbf16, #tpu.memory_space<vmem>>, vector<128x128xbf16>
    %cst_10 = arith.constant dense<0.000000e+00> : vector<8x128xf32>
    %13 = tpu.matmul %11, %12, %cst_10 {dimension_numbers = #tpu.dot_dimension_numbers<[1], [0], [0], [1], [0, 0, 1, 1], [], []>} : vector<8x128xbf16>, vector<128x128xbf16>, vector<8x128xf32> -> vector<8x128xf32>
    %c0_11 = arith.constant 0 : index
    %c0_12 = arith.constant 0 : index
    %14 = vector.load %arg6[%c0_11, %c0_12] : memref<1x128xf32, #tpu.memory_space<vmem>>, vector<1x128xf32>
    %15 = vector.broadcast %14 : vector<1x128xf32> to vector<8x128xf32>
    %16 = arith.addf %13, %15 : vector<8x128xf32>
    %17 = tpu.iota {dimensions = array<i32: 1>} : vector<8x128xi32>
    %c102_i32 = arith.constant 102 : i32
    %18 = vector.broadcast %c102_i32 : i32 to vector<8x128xi32>
    %19 = arith.cmpi slt, %17, %18 : vector<8x128xi32>
    %cst_13 = arith.constant 0xFF800000 : f32
    %20 = vector.broadcast %cst_13 : f32 to vector<8x128xf32>
    %21 = arith.select %19, %16, %20 : vector<8x128xi1>, vector<8x128xf32>
    %cst_14 = arith.constant dense<0xFF800000> : vector<8xf32>
    %22 = vector.multi_reduction <maximumf>, %21, %cst_14 [1] : vector<8x128xf32> to vector<8xf32>
    %23 = vector.shape_cast %22 : vector<8xf32> to vector<8x1xf32>
    %24 = vector.broadcast %23 : vector<8x1xf32> to vector<8x128xf32>
    %25 = arith.subf %21, %24 : vector<8x128xf32>
    %26 = math.exp %25 : vector<8x128xf32>
    %cst_15 = arith.constant dense<0.000000e+00> : vector<8xf32>
    %27 = vector.multi_reduction <add>, %26, %cst_15 [1] : vector<8x128xf32> to vector<8xf32>
    %28 = vector.shape_cast %27 : vector<8xf32> to vector<8x1xf32>
    %29 = math.log %28 : vector<8x1xf32>
    %30 = vector.broadcast %29 : vector<8x1xf32> to vector<8x128xf32>
    %31 = arith.subf %25, %30 : vector<8x128xf32>
    %c0_16 = arith.constant 0 : index
    %c0_17 = arith.constant 0 : index
    %32 = vector.load %arg7[%c0_16, %c0_17] : memref<8x128xf32, #tpu.memory_space<vmem>>, vector<8x128xf32>
    tpu.vector_store %arg7[%c0_16, %c0_17], %31 {strides = array<i32>} : memref<8x128xf32, #tpu.memory_space<vmem>>, vector<8x128xf32>,
    return
  }
  func.func @transform_0(%arg0: i32) -> (i32, i32) {
    %c0_i32 = arith.constant 0 : i32
    %c0_i32_0 = arith.constant 0 : i32
    return %arg0, %c0_i32 : i32, i32
  }
  func.func @transform_1(%arg0: i32) -> (i32, i32) {
    %c0_i32 = arith.constant 0 : i32
    %c0_i32_0 = arith.constant 0 : i32
    return %arg0, %c0_i32 : i32, i32
  }
  func.func @transform_2(%arg0: i32) -> (i32, i32) {
    %c0_i32 = arith.constant 0 : i32
    %c0_i32_0 = arith.constant 0 : i32
    %c0_i32_1 = arith.constant 0 : i32
    return %c0_i32, %c0_i32_0 : i32, i32
  }
  func.func @transform_3(%arg0: i32) -> (i32, i32) {
    %c0_i32 = arith.constant 0 : i32
    %c0_i32_0 = arith.constant 0 : i32
    %c0_i32_1 = arith.constant 0 : i32
    return %c0_i32, %c0_i32_0 : i32, i32
  }
  func.func @transform_4(%arg0: i32) -> (i32, i32) {
    %c0_i32 = arith.constant 0 : i32
    %c0_i32_0 = arith.constant 0 : i32
    %c0_i32_1 = arith.constant 0 : i32
    return %c0_i32, %c0_i32_0 : i32, i32
  }
  func.func @transform_5(%arg0: i32) -> (i32, i32) {
    %c0_i32 = arith.constant 0 : i32
    %c0_i32_0 = arith.constant 0 : i32
    %c0_i32_1 = arith.constant 0 : i32
    return %c0_i32, %c0_i32_0 : i32, i32
  }
  func.func @transform_6(%arg0: i32) -> (i32, i32) {
    %c0_i32 = arith.constant 0 : i32
    %c0_i32_0 = arith.constant 0 : i32
    return %arg0, %c0_i32 : i32, i32
  }
}

</mosaic_0001>

<bundles_post_ra>
// kernel: tpu_custom_call.1
= control target key start
LH: loop header
LB: loop body
LE: loop exit
PB: predicated region body
PF: predicated region fallthrough
CT: control target
= control target key end

     0   :  { %11 = vsyncpa [#allocation3], 0  ;;  %s669_s0 = inlined_call_operand.hbm [shape: f32[8,128], index: 0, kind: input, shape index: {}]   ;;  %s670_s1 = inlined_call_operand.hbm [shape: f32[8,128], index: 1, kind: input, shape index: {}]   ;;  %s671_s2 = inlined_call_operand.hbm [shape: bf16[128,128], index: 2, kind: input, shape index: {}]   ;;  %s672_s3 = inlined_call_operand.vmem [shape: f32[1,128], index: 3, kind: input, shape index: {}]   ;;  %s673_s4 = inlined_call_operand.hbm [shape: bf16[128,128], index: 4, kind: input, shape index: {}]   ;;  %s674_s5 = inlined_call_operand.vmem [shape: f32[1,128], index: 5, kind: input, shape index: {}]   ;;  %s675_s6 = inlined_call_operand.hbm [shape: f32[8,128], index: 6, kind: output, shape index: {}]  }
   0x1   :  { %12 = vsyncpa [#allocation6], 0 }
   0x2   :  { %13 = vsyncpa [#allocation9], 0 }
   0x3   :  { %14 = vsyncpa [#allocation4], 0  ;;  %s559_s21 = smov [#allocation5]   ;;  %s560_s23 = smov [#allocation2]  }
   0x4   :  { %s31_s22 = sshll.u32 %s559_s21, 4  ;;  %s21_s24 = sshll.u32 %s560_s23, 4  ;;  %s32_s22 = int_to_ptr.vmem [resolvable:$true] %s31_s22  ;;  %s22_s24 = int_to_ptr.vmem [resolvable:$true] %s21_s24 }
   0x5   :  { %s441_s27 = scalar_lea.hbm %s670_s1, 128 }
   0x6   :  { %p442_p0 = scmp.ne.s32.totalorder %s670_s1, %s441_s27  ;;  %p445_p1 = scmp.lt.u32.totalorder %s441_s27, %s670_s1 }
   0x8   :  { %p447_p2 = pnand %p445_p1, %p442_p0 }
   0xa   :  { %450 = shalt.err (!%p447_p2)
}
   0xb   :  { %s451_s8 = scalar_lea.vmem %s32_s22, 128  ;;  %p456_p4 = scmp.lt.s32.totalorder %s32_s22, %s32_s22 }
   0xc   :  { %p452_p3 = scmp.ne.s32.totalorder %s32_s22, %s451_s8  ;;  %p457_p5 = scmp.lt.s32.totalorder %s451_s8, %s451_s8 }
   0xe   :  { %p458_p6 = por %p457_p5, %p456_p4 }
  0x10   :  { %p459_p7 = pnand %p458_p6, %p452_p3 }
  0x12   :  { %462 = shalt.err (!%p459_p7)
}
  0x13   :  { %34 = dma.hbm_to_vmem [thread:$0]  %s670_s1, 128, %s32_s22, [#allocation6]  }
  0x14   :  { %s463_s13 = scalar_lea.hbm %s669_s0, 128 }
  0x15   :  { %p464_p8 = scmp.ne.s32.totalorder %s669_s0, %s463_s13  ;;  %p467_p9 = scmp.lt.u32.totalorder %s463_s13, %s669_s0 }
  0x17   :  { %p469_p10 = pnand %p467_p9, %p464_p8 }
  0x19   :  { %472 = shalt.err (!%p469_p10)
}
  0x1a   :  { %s473_s18 = scalar_lea.vmem %s22_s24, 128  ;;  %p478_p12 = scmp.lt.s32.totalorder %s22_s24, %s22_s24 }
  0x1b   :  { %p474_p11 = scmp.ne.s32.totalorder %s22_s24, %s473_s18  ;;  %p479_p13 = scmp.lt.s32.totalorder %s473_s18, %s473_s18 }
  0x1d   :  { %p480_p0 = por %p479_p13, %p478_p12 }
  0x1f   :  { %p481_p1 = pnand %p480_p0, %p474_p11 }
  0x21   :  { %484 = shalt.err (!%p481_p1)
}
  0x22   :  { %24 = dma.hbm_to_vmem [thread:$0]  %s669_s0, 128, %s22_s24, [#allocation3]  }
  0x23   :  { %s561_s20 = smov [#allocation7]   ;;  %s485_s25 = scalar_lea.hbm %s671_s2, 1024 }
  0x24   :  { %s40_s21 = sshll.u32 %s561_s20, 4  ;;  %p486_p2 = scmp.ne.s32.totalorder %s671_s2, %s485_s25  ;;  %s41_s21 = int_to_ptr.vmem [resolvable:$true] %s40_s21 }
  0x25   :  { %p489_p3 = scmp.lt.u32.totalorder %s485_s25, %s671_s2 }
  0x27   :  { %p491_p4 = pnand %p489_p3, %p486_p2 }
  0x29   :  { %494 = shalt.err (!%p491_p4)
}
  0x2a   :  { %s495_s30 = scalar_lea.vmem %s41_s21, 1024  ;;  %p500_p6 = scmp.lt.s32.totalorder %s41_s21, %s41_s21 }
  0x2b   :  { %p496_p5 = scmp.ne.s32.totalorder %s41_s21, %s495_s30  ;;  %p501_p7 = scmp.lt.s32.totalorder %s495_s30, %s495_s30 }
  0x2d   :  { %p502_p8 = por %p501_p7, %p500_p6 }
  0x2f   :  { %p503_p9 = pnand %p502_p8, %p496_p5 }
  0x31   :  { %506 = shalt.err (!%p503_p9)
}
  0x32   :  { %s562_s0 = smov 64   ;;  %s563_s24 = smov 4  }
  0x33   :  { %46 = dma.hbm_to_vmem [thread:$0]  %s671_s2, 1024, %s41_s21, [#allocation6], %s562_s0, %s562_s0, %s563_s24  }
  0x34   :  { %s564_s9 = smov [#allocation8]   ;;  %s507_s13 = scalar_lea.hbm %s673_s4, 1024 }
  0x35   :  { %s54_s10 = sshll.u32 %s564_s9, 4  ;;  %p508_p10 = scmp.ne.s32.totalorder %s673_s4, %s507_s13  ;;  %s55_s10 = int_to_ptr.vmem [resolvable:$true] %s54_s10 }
  0x36   :  { %p511_p11 = scmp.lt.u32.totalorder %s507_s13, %s673_s4 }
  0x38   :  { %p513_p12 = pnand %p511_p11, %p508_p10 }
  0x3a   :  { %516 = shalt.err (!%p513_p12)
}
  0x3b   :  { %s517_s18 = scalar_lea.vmem %s55_s10, 1024  ;;  %p522_p0 = scmp.lt.s32.totalorder %s55_s10, %s55_s10 }
  0x3c   :  { %p518_p13 = scmp.ne.s32.totalorder %s55_s10, %s517_s18  ;;  %p523_p1 = scmp.lt.s32.totalorder %s517_s18, %s517_s18 }
  0x3e   :  { %p524_p2 = por %p523_p1, %p522_p0 }
  0x40   :  { %p525_p3 = pnand %p524_p2, %p518_p13 }
  0x42   :  { %528 = shalt.err (!%p525_p3)
}
  0x43   :  { %60 = dma.hbm_to_vmem [thread:$0]  %s673_s4, 1024, %s55_s10, [#allocation9], %s562_s0, %s562_s0, %s563_s24  }
  0x44   :  { %551 = dma.done.wait [#allocation3], 128  }
  0x45   :  { %552 = vsyncadd [#allocation3], 4294967168 }
  0x46   :  { %553 = dma.done.wait [#allocation6], 1152  }
  0x47   :  { %554 = vsyncadd [#allocation6], 4294966144 }
  0x48   :  { %555 = dma.done.wait [#allocation9], 1024  }
  0x49   :  { %556 = vsyncadd [#allocation9], 4294966272  ;;  %v565_v0 = vmov 0.0   ;;  %vm566_vm0 = vmmov 0   ;;  %v421_v1 = vld [vmem:[#allocation7] sm:$0xff]   ;;  %v422_v2 = vld [vmem:[#allocation7 + $0x8] sm:$0xff]   ;;  %v304_v29 = vlaneseq }
  0x4a   :  { %372 = vmatprep.subr.bf16.mxu0 %v565_v0  ;;  %388 = vmatprep.mubr.msk.bf16.mxu0 %vm566_vm0, %v565_v0  ;;  %v423_v3 = vld [vmem:[#allocation7 + $0x10] sm:$0xff]   ;;  %v429_v4 = vld [vmem:[#allocation8] sm:$0xff]   ;;  %v424_v5 = vld [vmem:[#allocation7 + $0x18] sm:$0xff]  }
  0x4b   :  { %392 = vmatprep.subr.bf16.mxu1 %v565_v0  ;;  %408 = vmatprep.mubr.msk.bf16.mxu1 %vm566_vm0, %v565_v0  ;;  %v430_v6 = vld [vmem:[#allocation8 + $0x8] sm:$0xff]   ;;  %v425_v7 = vld [vmem:[#allocation7 + $0x20] sm:$0xff]   ;;  %v431_v8 = vld [vmem:[#allocation8 + $0x10] sm:$0xff]   ;;  %v305_v30 = vand.u32 127, %v304_v29 }
  0x4c   :  { %373 = vmatpush3.bf16.msra.mxu0 %v421_v1  ;;  %393 = vmatpush3.bf16.msra.mxu1 %v429_v4  ;;  %v426_v9 = vld [vmem:[#allocation7 + $0x28] sm:$0xff]   ;;  %v432_v10 = vld [vmem:[#allocation8 + $0x18] sm:$0xff]   ;;  %v427_v11 = vld [vmem:[#allocation7 + $0x30] sm:$0xff]  }
  0x4d   :  { %374 = vmatprep.subr.bf16.mxu0 %v565_v0  ;;  %394 = vmatprep.subr.bf16.mxu1 %v565_v0  ;;  %v76_v12 = vld [vmem:[#allocation2] sm:$0xff]  ;;  %v77_v13 = vld [vmem:[#allocation5] sm:$0xff]  ;;  %v433_v14 = vld [vmem:[#allocation8 + $0x20] sm:$0xff]   ;;  %vm306_vm1 = vcmp.lt.s32.totalorder %v305_v30, 102 }
  0x4e   :  { %v78_v15 = vmul.f32 %v77_v13, %v76_v12  ;;  %v428_v16 = vld [vmem:[#allocation7 + $0x38] sm:$0xff]   ;;  %v434_v17 = vld [vmem:[#allocation8 + $0x28] sm:$0xff]   ;;  %v435_v19 = vld [vmem:[#allocation8 + $0x30] sm:$0xff]  }
  0x4f   :  { %v436_v20 = vld [vmem:[#allocation8 + $0x38] sm:$0xff]   ;;  %v336_v21 = vld [vmem:[%s672_s3] ss:$0 sm:$0xff]  ;;  %s567_s3 = smov [#allocation10]  }
  0x50   :  { %375 = vmatpush3.bf16.msra.mxu0 %v422_v2  ;;  %395 = vmatpush3.bf16.msra.mxu1 %v430_v6  ;;  %v79_v18 = vpack.c.bf16 %v78_v15, %v78_v15  ;;  %v345_v31 = vld [vmem:[%s674_s5] ss:$0 sm:$0xff]  ;;  %s325_s22 = sshll.u32 %s567_s3, 4  ;;  %s326_s22 = int_to_ptr.vmem [resolvable:$true] %s325_s22 }
  0x51   :  { %376 = vmatprep.subr.bf16.mxu0 %v565_v0  ;;  %396 = vmatprep.subr.bf16.mxu1 %v565_v0  ;;  %s529_s5 = scalar_lea.vmem %s326_s22, 128  ;;  %p534_p5 = scmp.lt.s32.totalorder %s326_s22, %s326_s22 }
  0x52   :  { %p530_p4 = scmp.ne.s32.totalorder %s326_s22, %s529_s5  ;;  %p535_p6 = scmp.lt.s32.totalorder %s529_s5, %s529_s5 }
  0x54   :  { %377 = vmatpush3.bf16.msra.mxu0 %v423_v3  ;;  %397 = vmatpush3.bf16.msra.mxu1 %v431_v8  ;;  %p536_p7 = por %p535_p6, %p534_p5 }
  0x55   :  { %378 = vmatprep.subr.bf16.mxu0 %v565_v0  ;;  %398 = vmatprep.subr.bf16.mxu1 %v565_v0 }
  0x56   :  { %p537_p8 = pnand %p536_p7, %p530_p4 }
  0x58   :  { %379 = vmatpush3.bf16.msra.mxu0 %v424_v5  ;;  %399 = vmatpush3.bf16.msra.mxu1 %v432_v10 }
  0x59   :  { %380 = vmatprep.subr.bf16.mxu0 %v565_v0  ;;  %400 = vmatprep.subr.bf16.mxu1 %v565_v0 }
  0x5c   :  { %381 = vmatpush3.bf16.msra.mxu0 %v425_v7  ;;  %401 = vmatpush3.bf16.msra.mxu1 %v433_v14 }
  0x5d   :  { %382 = vmatprep.subr.bf16.mxu0 %v565_v0  ;;  %402 = vmatprep.subr.bf16.mxu1 %v565_v0 }
  0x60   :  { %383 = vmatpush3.bf16.msra.mxu0 %v426_v9  ;;  %403 = vmatpush3.bf16.msra.mxu1 %v434_v17 }
  0x61   :  { %384 = vmatprep.subr.bf16.mxu0 %v565_v0  ;;  %404 = vmatprep.subr.bf16.mxu1 %v565_v0 }
  0x64   :  { %385 = vmatpush3.bf16.msra.mxu0 %v427_v11  ;;  %405 = vmatpush3.bf16.msra.mxu1 %v435_v19 }
  0x65   :  { %386 = vmatprep.subr.bf16.mxu0 %v565_v0  ;;  %406 = vmatprep.subr.bf16.mxu1 %v565_v0 }
  0x68   :  { %387 = vmatpush3.bf16.msra.mxu0 %v428_v16  ;;  %407 = vmatpush3.bf16.msra.mxu1 %v436_v20 }
  0x6b   :  { %389 = vmatmul.mubr.bf16.vlgmr.msra.gmra.mrb[0].mxu0 %v79_v18 }
 0x13e   :  { %v185_v22 = vpop.f32.mrb[0].mxu0 }
 0x13f   :  { %v186_v23 = vadd.f32 %v336_v21, %v185_v22  ;;  %v390_v24 = vpop.f32.mrb[1].mxu0 }
 0x140   :  { %v188_v25 = vpop.f32.mrb[2].mxu0 }
 0x141   :  { %v191_v26 = vmax.f32 %v186_v23, 0.0  ;;  %v391_v27 = vpop.f32.mrb[3].mxu0 }
 0x143   :  { %v192_v28 = vpack.c.bf16 %v191_v26, %v191_v26 }
 0x145   :  { %409 = vmatmul.mubr.bf16.vlgmr.msra.gmra.mrb[0].mxu1 %v192_v28 }
 0x218   :  { %v298_v32 = vpop.f32.mrb[0].mxu1 }
 0x219   :  { %v299_v33 = vadd.f32 %v345_v31, %v298_v32  ;;  %v410_v34 = vpop.f32.mrb[1].mxu1 }
 0x21a   :  { %v301_v35 = vpop.f32.mrb[2].mxu1 }
 0x21b   :  { %v411_v36 = vpop.f32.mrb[3].mxu1  ;;  %v307_v37 = vsel %vm306_vm1, %v299_v33, -inf }
 0x21c   :  { %308 = vmax.xlane.f32.xlu0 %v307_v37 }
 0x2a9   :  { %v309_v38 = vpop.xlane.xlu0 %308 }
 0x2aa   :  { %v310_v39 = vsub.f32 %v307_v37, %v309_v38 }
 0x2ac   :  { %v311_v40 = vmul.f32 1.442695, %v310_v39 }
 0x2ae   :  { %437 = vpow2.f32 %v311_v40 }
 0x2b8   :  { %v438_v41 = vpop.eup %437 }
 0x2b9   :  { %313 = vadd.xlane.f32.xlu0 %v438_v41 }
 0x346   :  { %v314_v42 = vpop.xlane.xlu0 %313 }
 0x347   :  { %439 = vlog2.f32 %v314_v42 }
 0x351   :  { %v440_v43 = vpop.eup %439 }
 0x352   :  { %v316_v44 = vmul.f32 0.6931472, %v440_v43 }
 0x354   :  { %v317_v45 = vsub.f32 %v310_v39, %v316_v44 }
 0x356   :  { %318 = vst [vmem:[#allocation10] sm:$0xff] %v317_v45 }
 0x357   :  { %540 = shalt.err (!%p537_p8)
}
 0x358   :  { %s541_s26 = scalar_lea.hbm %s675_s6, 128 }
 0x359   :  { %p542_p9 = scmp.ne.s32.totalorder %s675_s6, %s541_s26  ;;  %p545_p10 = scmp.lt.u32.totalorder %s541_s26, %s675_s6 }
 0x35b   :  { %p547_p11 = pnand %p545_p10, %p542_p9 }
 0x35d   :  { %550 = shalt.err (!%p547_p11)
}
 0x35e   :  { %328 = dma.vmem_to_hbm [thread:$0]  %s326_s22, 128, %s675_s6, [#allocation4]  }
 0x35f   :  { %557 = dma.done.wait [#allocation4], 128  }
 0x360   :  { %558 = vsyncadd [#allocation4], 4294967168 }
 0x361   :  { %332 = vsyncpa [#allocation3], 1 }
 0x362   :  { %333 = vsyncpa [#allocation6], 1 }
 0x363   :  { %334 = vsyncpa [#allocation9], 1 }
 0x364   :  { %335 = vsyncpa [#allocation4], 1 }

</bundles_post_ra>
